<compile_context>
chip_gen: v7x
topology: tpu7x:2x2x1
jax: 0.10.0
libtpu: 0.0.40
codegen_flags: <defaults>
</compile_context>

<pallas_src>
import functools

import jax
import jax.numpy as jnp
import numpy as np
from jax import lax
from jax.experimental import pallas as pl
from jax.experimental.pallas import tpu as pltpu

_SOBEL_X = ((-1., 0., 1.), (-2., 0., 2.), (-1., 0., 1.))   # weight_h
_SOBEL_Y = ((-1., -2., -1.), (0., 0., 0.), (1., 2., 1.))   # weight_v
_GRAY_COEFFS = (65.738 / 256.0, 129.057 / 256.0, 25.064 / 256.0)


def _round_up(x, m):
    return (x + m - 1) // m * m


def _roll(x, shift, axis):
    # pltpu.roll follows np.roll semantics; canonicalize to non-negative shift.
    return pltpu.roll(x, shift % x.shape[axis], axis)


def _grad_kernel(x_ref, o_ref, *, coeffs, H, W):
    # x_ref: (B, C, Hp, Wp) zero canvas, image placed at offset (2, 2)
    #        (the zero ring of conv2d(padding=1); reflect ring filled below).
    #        Hp % 8 == 0, Wp % 128 == 0  -> all rolls/stores are tile-aligned.
    # o_ref: (B, Ho, Wp) with Ho = H + 2 (channel dim squeezed by BlockSpec).
    B, C, Hp, Wp = x_ref.shape
    Ho = H + 2

    rows = lax.broadcasted_iota(jnp.int32, (Hp, Wp), 0)
    cols = lax.broadcasted_iota(jnp.int32, (Hp, Wp), 1)
    row_top, row_bot = rows == 1, rows == H + 2
    col_lft, col_rgt = cols == 1, cols == W + 2

    for b in range(B):                       # static unroll over images/step
        # ---- grayscale (C == 3) / passthrough (C == 1) --------------------
        g = x_ref[b, 0] * coeffs[0]
        for c in range(1, C):
            g = g + x_ref[b, c] * coeffs[c]

        # ---- reflect(1) halo, built in-kernel (rolls + masks) -------------
        # canvas row 1 := row 3 (image row 1), row H+2 := row H (image H-2);
        # then the same along columns (rows first -> correct corners).
        g = jnp.where(row_top, _roll(g, -2, 0),
                      jnp.where(row_bot, _roll(g, 2, 0), g))
        g = jnp.where(col_lft, _roll(g, -2, 1),
                      jnp.where(col_rgt, _roll(g, 2, 1), g))

        # ---- separable Sobel (cross-correlation, no kernel flip) ----------
        g1 = _roll(g, -1, 1)                 # g[:, j+1]   (lane roll, XLU)
        g2 = _roll(g, -2, 1)                 # g[:, j+2]
        d = g2 - g                           # [-1, 0, 1] along columns
        s = g + 2.0 * g1 + g2                # [ 1, 2, 1] along columns
        h = d + 2.0 * _roll(d, -1, 0) + _roll(d, -2, 0)   # weight_h result
        v = _roll(s, -2, 0) - s                           # weight_v result

        o_ref[b] = jnp.sqrt(h * h + v * v + 1e-6)[:Ho, :]


def grad_layer(x, *, batch_block=None):
    """x: (N, C, H, W) float32 with C in {1, 3}. Returns (N, 1, H+2, W+2)."""
    N, C, H, W = x.shape
    assert C in (1, 3), "GradLayer expects 1 or 3 input channels"
    assert H >= 2 and W >= 2, "reflect padding needs H, W >= 2"
    coeffs = _GRAY_COEFFS if C == 3 else (1.0,)

    Ho, Wo = H + 2, W + 2
    Hp = _round_up(H + 4, 8)        # sublane-aligned canvas height
    Wp = _round_up(W + 4, 128)      # lane-dense canvas width

    # Single constant pad: image at offset (2, 2) on a zero canvas
    # (= conv2d zero ring + alignment padding). Reflect ring is done in-kernel.
    xp = jnp.pad(x, ((0, 0), (0, 0), (2, Hp - H - 2), (2, Wp - W - 2)))

    # Images per grid step: amortize per-step overhead for small images while
    # keeping the (double-buffered) block footprint modest.
    if batch_block is None:
        per_img = (C * Hp + Ho) * Wp * 4                  # bytes in+out / image
        cap = max(1, (2 * 1024 * 1024) // per_img)
        batch_block = 1
        for b in range(1, min(N, 8, cap) + 1):
            if N % b == 0:
                batch_block = b
    B = batch_block
    assert N % B == 0
    grid = (N // B,)

    # Raise the scoped-VMEM limit only when the blocks actually need it.
    # TODO(synk): for very large images add an H-strip grid axis (2-row halo)
    # and re-derive strip sizes for v7x's 64 MiB physical VMEM.
    est = 2 * (B * C * Hp * Wp + B * Ho * Wp) * 4         # double-buffered
    vmem_limit = int(min(100 * 2**20, est + 32 * 2**20)) if est > 12 * 2**20 else None

    kernel = functools.partial(_grad_kernel, coeffs=coeffs, H=H, W=W)
    out_padded = pl.pallas_call(
        kernel,
        out_shape=jax.ShapeDtypeStruct((N, 1, Ho, Wp), jnp.float32),
        grid_spec=pltpu.PrefetchScalarGridSpec(
            num_scalar_prefetch=0,
            grid=grid,
            in_specs=[pl.BlockSpec((B, C, Hp, Wp), lambda n: (n, 0, 0, 0))],
            out_specs=pl.BlockSpec((B, None, Ho, Wp), lambda n: (n, 0, 0, 0)),
        ),
        compiler_params=pltpu.CompilerParams(
            dimension_semantics=("parallel",),
            vmem_limit_bytes=vmem_limit,
        ),
    )(xp)

    # Slice the lane padding back off (layout plumbing only).
    return out_padded[:, :, :, :Wo]


def _reference(x):
    """Pure-JAX reference matching the PyTorch forward."""
    N, C, H, W = x.shape
    if C == 3:
        coeffs = jnp.array(_GRAY_COEFFS, jnp.float32).reshape(1, 3, 1, 1)
        x = jnp.sum(x * coeffs, axis=1, keepdims=True)
    xp = jnp.pad(x, ((0, 0), (0, 0), (1, 1), (1, 1)), mode="reflect")
    xp = jnp.pad(xp, ((0, 0), (0, 0), (1, 1), (1, 1)))
    wv = jnp.array(_SOBEL_Y, jnp.float32).reshape(1, 1, 3, 3)
    wh = jnp.array(_SOBEL_X, jnp.float32).reshape(1, 1, 3, 3)
    dn = jax.lax.conv_dimension_numbers(xp.shape, wv.shape, ("NCHW", "OIHW", "NCHW"))
    xv = jax.lax.conv_general_dilated(xp, wv, (1, 1), "VALID", dimension_numbers=dn)
    xh = jax.lax.conv_general_dilated(xp, wh, (1, 1), "VALID", dimension_numbers=dn)
    return jnp.sqrt(xv * xv + xh * xh + 1e-6)


if __name__ == "__main__":
    key = jax.random.PRNGKey(0)
    x = jax.random.uniform(key, (2, 3, 16, 16), dtype=jnp.float32)

    out = jax.block_until_ready(jax.jit(grad_layer)(x))
    ref = jax.block_until_ready(_reference(x))

    assert out.shape == (2, 1, 18, 18), out.shape
    np.testing.assert_allclose(np.asarray(out), np.asarray(ref), rtol=1e-5, atol=1e-5)
    print("KERNEL_OK")
</pallas_src>

<mosaic_0001>
module attributes {stable_mosaic.version = 11 : i64} {
  func.func @_grad_kernel(%arg0: i32, %arg1: memref<2x3x24x128xf32, #tpu.memory_space<vmem>>, %arg2: memref<2x1x18x128xf32, #tpu.memory_space<vmem>>) attributes {dimension_semantics = [#tpu.dimension_semantics<parallel>], iteration_bounds = array<i64: 1>, scalar_prefetch = 0 : i64, scratch_operands = 0 : i64, tpu.core_type = #tpu.core_type<tc>, window_params = [{transform_indices = @transform_0, window_bounds = array<i64: 2, 3, 24, 128>}, {transform_indices = @transform_1, window_bounds = array<i64: 2, 1, 18, 128>}]} {
    %0 = tpu.iota {dimensions = array<i32: 0>} : vector<24x128xi32>
    %1 = tpu.iota {dimensions = array<i32: 1>} : vector<24x128xi32>
    %c1_i32 = arith.constant 1 : i32
    %2 = vector.broadcast %c1_i32 : i32 to vector<24x128xi32>
    %3 = arith.cmpi eq, %0, %2 : vector<24x128xi32>
    %c18_i32 = arith.constant 18 : i32
    %4 = vector.broadcast %c18_i32 : i32 to vector<24x128xi32>
    %5 = arith.cmpi eq, %0, %4 : vector<24x128xi32>
    %c1_i32_0 = arith.constant 1 : i32
    %6 = vector.broadcast %c1_i32_0 : i32 to vector<24x128xi32>
    %7 = arith.cmpi eq, %1, %6 : vector<24x128xi32>
    %c18_i32_1 = arith.constant 18 : i32
    %8 = vector.broadcast %c18_i32_1 : i32 to vector<24x128xi32>
    %9 = arith.cmpi eq, %1, %8 : vector<24x128xi32>
    %c0 = arith.constant 0 : index
    %c0_2 = arith.constant 0 : index
    %c0_3 = arith.constant 0 : index
    %c0_4 = arith.constant 0 : index
    %10 = vector.load %arg1[%c0, %c0_2, %c0_3, %c0_4] : memref<2x3x24x128xf32, #tpu.memory_space<vmem>>, vector<1x1x24x128xf32>
    %11 = vector.shape_cast %10 : vector<1x1x24x128xf32> to vector<24x128xf32>
    %cst = arith.constant 0.256789058 : f32
    %12 = vector.broadcast %cst : f32 to vector<24x128xf32>
    %13 = arith.mulf %11, %12 : vector<24x128xf32>
    %c0_5 = arith.constant 0 : index
    %c1 = arith.constant 1 : index
    %c0_6 = arith.constant 0 : index
    %c0_7 = arith.constant 0 : index
    %14 = vector.load %arg1[%c0_5, %c1, %c0_6, %c0_7] : memref<2x3x24x128xf32, #tpu.memory_space<vmem>>, vector<1x1x24x128xf32>
    %15 = vector.shape_cast %14 : vector<1x1x24x128xf32> to vector<24x128xf32>
    %cst_8 = arith.constant 0.504128933 : f32
    %16 = vector.broadcast %cst_8 : f32 to vector<24x128xf32>
    %17 = arith.mulf %15, %16 : vector<24x128xf32>
    %18 = arith.addf %13, %17 : vector<24x128xf32>
    %c0_9 = arith.constant 0 : index
    %c2 = arith.constant 2 : index
    %c0_10 = arith.constant 0 : index
    %c0_11 = arith.constant 0 : index
    %19 = vector.load %arg1[%c0_9, %c2, %c0_10, %c0_11] : memref<2x3x24x128xf32, #tpu.memory_space<vmem>>, vector<1x1x24x128xf32>
    %20 = vector.shape_cast %19 : vector<1x1x24x128xf32> to vector<24x128xf32>
    %cst_12 = arith.constant 0.0979062467 : f32
    %21 = vector.broadcast %cst_12 : f32 to vector<24x128xf32>
    %22 = arith.mulf %20, %21 : vector<24x128xf32>
    %23 = arith.addf %18, %22 : vector<24x128xf32>
    %c22_i32 = arith.constant 22 : i32
    %24 = tpu.dynamic_rotate %23 by %c22_i32 dim 0 : vector<24x128xf32>, i32 -> vector<24x128xf32>
    %c2_i32 = arith.constant 2 : i32
    %25 = tpu.dynamic_rotate %23 by %c2_i32 dim 0 : vector<24x128xf32>, i32 -> vector<24x128xf32>
    %26 = arith.select %5, %25, %23 : vector<24x128xi1>, vector<24x128xf32>
    %27 = arith.select %3, %24, %26 : vector<24x128xi1>, vector<24x128xf32>
    %c126_i32 = arith.constant 126 : i32
    %28 = tpu.dynamic_rotate %27 by %c126_i32 dim 1 : vector<24x128xf32>, i32 -> vector<24x128xf32>
    %c2_i32_13 = arith.constant 2 : i32
    %29 = tpu.dynamic_rotate %27 by %c2_i32_13 dim 1 : vector<24x128xf32>, i32 -> vector<24x128xf32>
    %30 = arith.select %9, %29, %27 : vector<24x128xi1>, vector<24x128xf32>
    %31 = arith.select %7, %28, %30 : vector<24x128xi1>, vector<24x128xf32>
    %c127_i32 = arith.constant 127 : i32
    %32 = tpu.dynamic_rotate %31 by %c127_i32 dim 1 : vector<24x128xf32>, i32 -> vector<24x128xf32>
    %c126_i32_14 = arith.constant 126 : i32
    %33 = tpu.dynamic_rotate %31 by %c126_i32_14 dim 1 : vector<24x128xf32>, i32 -> vector<24x128xf32>
    %34 = arith.subf %33, %31 : vector<24x128xf32>
    %cst_15 = arith.constant 2.000000e+00 : f32
    %35 = vector.broadcast %cst_15 : f32 to vector<24x128xf32>
    %36 = arith.mulf %35, %32 : vector<24x128xf32>
    %37 = arith.addf %31, %36 : vector<24x128xf32>
    %38 = arith.addf %37, %33 : vector<24x128xf32>
    %c23_i32 = arith.constant 23 : i32
    %39 = tpu.dynamic_rotate %34 by %c23_i32 dim 0 : vector<24x128xf32>, i32 -> vector<24x128xf32>
    %cst_16 = arith.constant 2.000000e+00 : f32
    %40 = vector.broadcast %cst_16 : f32 to vector<24x128xf32>
    %41 = arith.mulf %40, %39 : vector<24x128xf32>
    %42 = arith.addf %34, %41 : vector<24x128xf32>
    %c22_i32_17 = arith.constant 22 : i32
    %43 = tpu.dynamic_rotate %34 by %c22_i32_17 dim 0 : vector<24x128xf32>, i32 -> vector<24x128xf32>
    %44 = arith.addf %42, %43 : vector<24x128xf32>
    %c22_i32_18 = arith.constant 22 : i32
    %45 = tpu.dynamic_rotate %38 by %c22_i32_18 dim 0 : vector<24x128xf32>, i32 -> vector<24x128xf32>
    %46 = arith.subf %45, %38 : vector<24x128xf32>
    %47 = arith.mulf %44, %44 : vector<24x128xf32>
    %48 = arith.mulf %46, %46 : vector<24x128xf32>
    %49 = arith.addf %47, %48 : vector<24x128xf32>
    %cst_19 = arith.constant 9.99999997E-7 : f32
    %50 = vector.broadcast %cst_19 : f32 to vector<24x128xf32>
    %51 = arith.addf %49, %50 : vector<24x128xf32>
    %52 = math.sqrt %51 : vector<24x128xf32>
    %53 = vector.extract_strided_slice %52 {offsets = [0, 0], sizes = [18, 128], strides = [1, 1]} : vector<24x128xf32> to vector<18x128xf32>
    %c0_20 = arith.constant 0 : index
    %c0_21 = arith.constant 0 : index
    %c0_22 = arith.constant 0 : index
    %c0_23 = arith.constant 0 : index
    %54 = vector.load %arg2[%c0_20, %c0_21, %c0_22, %c0_23] : memref<2x1x18x128xf32, #tpu.memory_space<vmem>>, vector<1x1x18x128xf32>
    %55 = vector.shape_cast %54 : vector<1x1x18x128xf32> to vector<18x128xf32>
    %56 = vector.shape_cast %53 : vector<18x128xf32> to vector<1x1x18x128xf32>
    tpu.vector_store %arg2[%c0_20, %c0_21, %c0_22, %c0_23], %56 {strides = array<i32>} : memref<2x1x18x128xf32, #tpu.memory_space<vmem>>, vector<1x1x18x128xf32>,
    %c1_24 = arith.constant 1 : index
    %c0_25 = arith.constant 0 : index
    %c0_26 = arith.constant 0 : index
    %c0_27 = arith.constant 0 : index
    %57 = vector.load %arg1[%c1_24, %c0_25, %c0_26, %c0_27] : memref<2x3x24x128xf32, #tpu.memory_space<vmem>>, vector<1x1x24x128xf32>
    %58 = vector.shape_cast %57 : vector<1x1x24x128xf32> to vector<24x128xf32>
    %cst_28 = arith.constant 0.256789058 : f32
    %59 = vector.broadcast %cst_28 : f32 to vector<24x128xf32>
    %60 = arith.mulf %58, %59 : vector<24x128xf32>
    %c1_29 = arith.constant 1 : index
    %c1_30 = arith.constant 1 : index
    %c0_31 = arith.constant 0 : index
    %c0_32 = arith.constant 0 : index
    %61 = vector.load %arg1[%c1_29, %c1_30, %c0_31, %c0_32] : memref<2x3x24x128xf32, #tpu.memory_space<vmem>>, vector<1x1x24x128xf32>
    %62 = vector.shape_cast %61 : vector<1x1x24x128xf32> to vector<24x128xf32>
    %cst_33 = arith.constant 0.504128933 : f32
    %63 = vector.broadcast %cst_33 : f32 to vector<24x128xf32>
    %64 = arith.mulf %62, %63 : vector<24x128xf32>
    %65 = arith.addf %60, %64 : vector<24x128xf32>
    %c1_34 = arith.constant 1 : index
    %c2_35 = arith.constant 2 : index
    %c0_36 = arith.constant 0 : index
    %c0_37 = arith.constant 0 : index
    %66 = vector.load %arg1[%c1_34, %c2_35, %c0_36, %c0_37] : memref<2x3x24x128xf32, #tpu.memory_space<vmem>>, vector<1x1x24x128xf32>
    %67 = vector.shape_cast %66 : vector<1x1x24x128xf32> to vector<24x128xf32>
    %cst_38 = arith.constant 0.0979062467 : f32
    %68 = vector.broadcast %cst_38 : f32 to vector<24x128xf32>
    %69 = arith.mulf %67, %68 : vector<24x128xf32>
    %70 = arith.addf %65, %69 : vector<24x128xf32>
    %c22_i32_39 = arith.constant 22 : i32
    %71 = tpu.dynamic_rotate %70 by %c22_i32_39 dim 0 : vector<24x128xf32>, i32 -> vector<24x128xf32>
    %c2_i32_40 = arith.constant 2 : i32
    %72 = tpu.dynamic_rotate %70 by %c2_i32_40 dim 0 : vector<24x128xf32>, i32 -> vector<24x128xf32>
    %73 = arith.select %5, %72, %70 : vector<24x128xi1>, vector<24x128xf32>
    %74 = arith.select %3, %71, %73 : vector<24x128xi1>, vector<24x128xf32>
    %c126_i32_41 = arith.constant 126 : i32
    %75 = tpu.dynamic_rotate %74 by %c126_i32_41 dim 1 : vector<24x128xf32>, i32 -> vector<24x128xf32>
    %c2_i32_42 = arith.constant 2 : i32
    %76 = tpu.dynamic_rotate %74 by %c2_i32_42 dim 1 : vector<24x128xf32>, i32 -> vector<24x128xf32>
    %77 = arith.select %9, %76, %74 : vector<24x128xi1>, vector<24x128xf32>
    %78 = arith.select %7, %75, %77 : vector<24x128xi1>, vector<24x128xf32>
    %c127_i32_43 = arith.constant 127 : i32
    %79 = tpu.dynamic_rotate %78 by %c127_i32_43 dim 1 : vector<24x128xf32>, i32 -> vector<24x128xf32>
    %c126_i32_44 = arith.constant 126 : i32
    %80 = tpu.dynamic_rotate %78 by %c126_i32_44 dim 1 : vector<24x128xf32>, i32 -> vector<24x128xf32>
    %81 = arith.subf %80, %78 : vector<24x128xf32>
    %cst_45 = arith.constant 2.000000e+00 : f32
    %82 = vector.broadcast %cst_45 : f32 to vector<24x128xf32>
    %83 = arith.mulf %82, %79 : vector<24x128xf32>
    %84 = arith.addf %78, %83 : vector<24x128xf32>
    %85 = arith.addf %84, %80 : vector<24x128xf32>
    %c23_i32_46 = arith.constant 23 : i32
    %86 = tpu.dynamic_rotate %81 by %c23_i32_46 dim 0 : vector<24x128xf32>, i32 -> vector<24x128xf32>
    %cst_47 = arith.constant 2.000000e+00 : f32
    %87 = vector.broadcast %cst_47 : f32 to vector<24x128xf32>
    %88 = arith.mulf %87, %86 : vector<24x128xf32>
    %89 = arith.addf %81, %88 : vector<24x128xf32>
    %c22_i32_48 = arith.constant 22 : i32
    %90 = tpu.dynamic_rotate %81 by %c22_i32_48 dim 0 : vector<24x128xf32>, i32 -> vector<24x128xf32>
    %91 = arith.addf %89, %90 : vector<24x128xf32>
    %c22_i32_49 = arith.constant 22 : i32
    %92 = tpu.dynamic_rotate %85 by %c22_i32_49 dim 0 : vector<24x128xf32>, i32 -> vector<24x128xf32>
    %93 = arith.subf %92, %85 : vector<24x128xf32>
    %94 = arith.mulf %91, %91 : vector<24x128xf32>
    %95 = arith.mulf %93, %93 : vector<24x128xf32>
    %96 = arith.addf %94, %95 : vector<24x128xf32>
    %cst_50 = arith.constant 9.99999997E-7 : f32
    %97 = vector.broadcast %cst_50 : f32 to vector<24x128xf32>
    %98 = arith.addf %96, %97 : vector<24x128xf32>
    %99 = math.sqrt %98 : vector<24x128xf32>
    %100 = vector.extract_strided_slice %99 {offsets = [0, 0], sizes = [18, 128], strides = [1, 1]} : vector<24x128xf32> to vector<18x128xf32>
    %c1_51 = arith.constant 1 : index
    %c0_52 = arith.constant 0 : index
    %c0_53 = arith.constant 0 : index
    %c0_54 = arith.constant 0 : index
    %101 = vector.load %arg2[%c1_51, %c0_52, %c0_53, %c0_54] : memref<2x1x18x128xf32, #tpu.memory_space<vmem>>, vector<1x1x18x128xf32>
    %102 = vector.shape_cast %101 : vector<1x1x18x128xf32> to vector<18x128xf32>
    %103 = vector.shape_cast %100 : vector<18x128xf32> to vector<1x1x18x128xf32>
    tpu.vector_store %arg2[%c1_51, %c0_52, %c0_53, %c0_54], %103 {strides = array<i32>} : memref<2x1x18x128xf32, #tpu.memory_space<vmem>>, vector<1x1x18x128xf32>,
    return
  }
  func.func @transform_0(%arg0: i32) -> (i32, i32, i32, i32) {
    %c0_i32 = arith.constant 0 : i32
    %c0_i32_0 = arith.constant 0 : i32
    %c0_i32_1 = arith.constant 0 : i32
    %c0_i32_2 = arith.constant 0 : i32
    return %arg0, %c0_i32, %c0_i32_0, %c0_i32_1 : i32, i32, i32, i32
  }
  func.func @transform_1(%arg0: i32) -> (i32, i32, i32, i32) {
    %c0_i32 = arith.constant 0 : i32
    %c0_i32_0 = arith.constant 0 : i32
    %c0_i32_1 = arith.constant 0 : i32
    %c0_i32_2 = arith.constant 0 : i32
    return %arg0, %c0_i32, %c0_i32_0, %c0_i32_1 : i32, i32, i32, i32
  }
}

</mosaic_0001>

<bundles_post_ra>
// kernel: grad_layer.1
= control target key start
LH: loop header
LB: loop body
LE: loop exit
PB: predicated region body
PF: predicated region fallthrough
CT: control target
= control target key end

     0   :  { %v8_v0 = vlaneseq  ;;  %s368_s28 = smov 2   ;;  %s369_s29 = smov 126   ;;  %s577_s0 = inlined_call_operand.vmem [shape: f32[2,3,24,128], index: 0, kind: input, shape index: {}]   ;;  %s578_s1 = inlined_call_operand.vmem [shape: f32[2,1,18,128], index: 1, kind: output, shape index: {}]  }
   0x1   :  { %v23_v1 = vld [vmem:[%s577_s0 + $0x8] sm:$0xff]  ;;  %v336_v2 = vld [vmem:[%s577_s0 + $0x20] sm:$0xff]  ;;  %v339_v3 = vld [vmem:[%s577_s0 + $0x38] sm:$0xff] }
   0x2   :  { %v26_v4 = vmul.f32 0.25678906, %v23_v1  ;;  %v33_v5 = vmul.f32 0.50412893, %v336_v2  ;;  %v43_v6 = vmul.f32 0.09790625, %v339_v3 }
   0x3   :  { %v342_v7 = vld [vmem:[%s577_s0 + $0x50] sm:$0xff]  ;;  %v345_v8 = vld [vmem:[%s577_s0 + $0x68] sm:$0xff]  ;;  %v348_v9 = vld [vmem:[%s577_s0 + $0x80] sm:$0xff]  ;;  %v400_v10 = vshrl.u32 %v8_v0, 7 }
   0x4   :  { %v36_v11 = vadd.f32 %v33_v5, %v26_v4  ;;  %v182_v12 = vmul.f32 0.25678906, %v342_v7  ;;  %v189_v13 = vmul.f32 0.50412893, %v345_v8  ;;  %v199_v14 = vmul.f32 0.09790625, %v348_v9 }
   0x5   :  { %v403_v15 = vadd.s32 16, %v400_v10  ;;  %v24_v16 = vld [vmem:[%s577_s0 + $0x10] sm:$0xff]  ;;  %v337_v17 = vld [vmem:[%s577_s0 + $0x28] sm:$0xff]  ;;  %v340_v18 = vld [vmem:[%s577_s0 + $0x40] sm:$0xff]  ;;  %vm58_vm0 = vcmp.lt.s32.totalorder %v400_v10, 2  ;;  %vm51_vm2 = vcmp.lt.s32.totalorder %v400_v10, 6 }
   0x6   :  { %v414_v19 = vadd.f32 %v43_v6, %v36_v11  ;;  %v192_v20 = vadd.f32 %v189_v13, %v182_v12  ;;  %v27_v21 = vmul.f32 0.25678906, %v24_v16  ;;  %v34_v22 = vmul.f32 0.50412893, %v337_v17  ;;  %v22_v23 = vld [vmem:[%s577_s0] sm:$0xff]  ;;  %v335_v24 = vld [vmem:[%s577_s0 + $0x18] sm:$0xff] }
   0x7   :  { %v44_v25 = vmul.f32 0.09790625, %v340_v18  ;;  %v25_v26 = vmul.f32 0.25678906, %v22_v23  ;;  %v32_v29 = vmul.f32 0.50412893, %v335_v24 }
   0x8   :  { %76 = vrot.lane.b32.xlu0 %v414_v19, %s368_s28  ;;  %70 = vrot.lane.b32.xlu1 %v414_v19, %s369_s29  ;;  %v426_v27 = vadd.f32 %v199_v14, %v192_v20  ;;  %v37_v28 = vadd.f32 %v34_v22, %v27_v21  ;;  %v338_v30 = vld [vmem:[%s577_s0 + $0x30] sm:$0xff]  ;;  %v341_v31 = vld [vmem:[%s577_s0 + $0x48] sm:$0xff]  ;;  %vm19_vm1 = vcmp.eq.s32.totalorder %v403_v15, 18  ;;  %v56_v36 = vrot.slane %v414_v19, 6 }
   0x9   :  { %v42_v32 = vmul.f32 0.09790625, %v338_v30  ;;  %v181_v33 = vmul.f32 0.25678906, %v341_v31  ;;  %v344_v34 = vld [vmem:[%s577_s0 + $0x60] sm:$0xff]  ;;  %v35_v37 = vadd.f32 %v32_v29, %v25_v26  ;;  %v347_v39 = vld [vmem:[%s577_s0 + $0x78] sm:$0xff] }
   0xa   :  { %v47_v35 = vadd.f32 %v44_v25, %v37_v28  ;;  %v188_v38 = vmul.f32 0.50412893, %v344_v34  ;;  %v343_v40 = vld [vmem:[%s577_s0 + $0x58] sm:$0xff]  ;;  %v346_v41 = vld [vmem:[%s577_s0 + $0x70] sm:$0xff]  ;;  %v198_v42 = vmul.f32 0.09790625, %v347_v39 }
   0xb   :  { %v183_v43 = vmul.f32 0.25678906, %v343_v40  ;;  %v190_v44 = vmul.f32 0.50412893, %v346_v41  ;;  %v45_v46 = vadd.f32 %v42_v32, %v35_v37  ;;  %v49_v47 = vrot.slane %v414_v19, 2  ;;  %v349_v49 = vld [vmem:[%s577_s0 + $0x88] sm:$0xff] }
   0xc   :  { %230 = vrot.lane.b32.xlu0 %v426_v27, %s368_s28  ;;  %v57_v45 = vrot.slane %v47_v35, 6  ;;  %v191_v48 = vadd.f32 %v188_v38, %v181_v33  ;;  %vm14_vm3 = vcmp.eq.s32.totalorder %v400_v10, 1  ;;  %v200_v51 = vmul.f32 0.09790625, %v349_v49  ;;  %s370_s0 = smov 127  }
   0xd   :  { %v193_v50 = vadd.f32 %v190_v44, %v183_v43  ;;  %v48_v53 = vrot.slane %v45_v46, 2  ;;  %v205_v55 = vrot.slane %v426_v27, 2  ;;  %v211_v58 = vrot.slane %v426_v27, 6 }
   0xe   :  { %v59_v52 = vsel %vm58_vm0, %v56_v36, %v57_v45  ;;  %v201_v54 = vadd.f32 %v198_v42, %v191_v48  ;;  %v13_v4 = vand.u32 127, %v8_v0  ;;  %vm113_vm6 = vcmp.lt.s32.totalorder %v400_v10, 7 }
   0xf   :  { %v64_v56 = vsel %vm19_vm1, %v59_v52, %v47_v35  ;;  %v203_v57 = vadd.f32 %v200_v51, %v193_v50  ;;  %v53_v59 = vsel %vm51_vm2, %v48_v53, %v49_v47 }
  0x10   :  { %78 = vrot.lane.b32.xlu1 %v64_v56, %s368_s28  ;;  %v204_v60 = vrot.slane %v201_v54, 2  ;;  %v65_v61 = vsel %vm14_vm3, %v53_v59, %v45_v46  ;;  %vm21_vm4 = vcmp.eq.s32.totalorder %v13_v4, 18  ;;  %vm20_vm5 = vcmp.eq.s32.totalorder %v13_v4, 1 }
  0x11   :  { %v212_v62 = vrot.slane %v203_v57, 6  ;;  %74 = vrot.lane.b32.xlu0 %v65_v61, %s368_s28 }
  0x12   :  { %v208_v63 = vsel %vm51_vm2, %v204_v60, %v205_v55 }
  0x13   :  { %v219_v1 = vsel %vm14_vm3, %v208_v63, %v201_v54  ;;  %v213_v2 = vsel %vm58_vm0, %v211_v58, %v212_v62 }
  0x14   :  { %228 = vrot.lane.b32.xlu1 %v219_v1, %s368_s28  ;;  %v218_v3 = vsel %vm19_vm1, %v213_v2, %v203_v57 }
  0x15   :  { %68 = vrot.lane.b32.xlu0 %v65_v61, %s369_s29 }
  0x18   :  { %232 = vrot.lane.b32.xlu1 %v218_v3, %s368_s28 }
  0x19   :  { %72 = vrot.lane.b32.xlu0 %v64_v56, %s369_s29 }
  0x1c   :  { %222 = vrot.lane.b32.xlu1 %v219_v1, %s369_s29 }
  0x1d   :  { %224 = vrot.lane.b32.xlu0 %v426_v27, %s369_s29 }
  0x20   :  { %226 = vrot.lane.b32.xlu1 %v218_v3, %s369_s29 }
  0x7a   :  { %v77_v5 = vpop.permute.xlu0 %76  ;;  %v71_v6 = vpop.permute.xlu1 %70 }
  0x7b   :  { %v81_v7 = vsel %vm21_vm4, %v77_v5, %v414_v19 }
  0x7c   :  { %v84_v8 = vsel %vm20_vm5, %v71_v6, %v81_v7 }
  0x7d   :  { %88 = vrot.lane.b32.xlu1 %v84_v8, %s370_s0  ;;  %94 = vrot.lane.b32.xlu0 %v84_v8, %s369_s29 }
  0x7e   :  { %v231_v9 = vpop.permute.xlu0 %230 }
  0x7f   :  { %v235_v23 = vsel %vm21_vm4, %v231_v9, %v426_v27 }
  0x82   :  { %v79_v11 = vpop.permute.xlu1 %78 }
  0x83   :  { %v75_v12 = vpop.permute.xlu0 %74  ;;  %v82_v16 = vsel %vm21_vm4, %v79_v11, %v64_v56 }
  0x84   :  { %v80_v14 = vsel %vm21_vm4, %v75_v12, %v65_v61 }
  0x86   :  { %v229_v13 = vpop.permute.xlu1 %228 }
  0x87   :  { %v69_v0 = vpop.permute.xlu0 %68  ;;  %v234_v18 = vsel %vm21_vm4, %v229_v13, %v219_v1 }
  0x88   :  { %v83_v15 = vsel %vm20_vm5, %v69_v0, %v80_v14 }
  0x89   :  { %86 = vrot.lane.b32.xlu0 %v83_v15, %s370_s0 }
  0x8a   :  { %v233_v17 = vpop.permute.xlu1 %232 }
  0x8b   :  { %v73_v19 = vpop.permute.xlu0 %72  ;;  %v236_v24 = vsel %vm21_vm4, %v233_v17, %v218_v3 }
  0x8c   :  { %v85_v20 = vsel %vm20_vm5, %v73_v19, %v82_v16 }
  0x8d   :  { %90 = vrot.lane.b32.xlu0 %v85_v20, %s370_s0 }
  0x8e   :  { %v223_v21 = vpop.permute.xlu1 %222 }
  0x8f   :  { %v496_v22 = vsel %vm20_vm5, %v223_v21, %v234_v18  ;;  %v225_v25 = vpop.permute.xlu0 %224 }
  0x90   :  { %v238_v26 = vsel %vm20_vm5, %v225_v25, %v235_v23 }
  0x91   :  { %240 = vrot.lane.b32.xlu0 %v496_v22, %s370_s0  ;;  %242 = vrot.lane.b32.xlu1 %v238_v26, %s370_s0 }
  0x92   :  { %v227_v28 = vpop.permute.xlu1 %226 }
  0x93   :  { %v504_v29 = vsel %vm20_vm5, %v227_v28, %v236_v24 }
  0x95   :  { %244 = vrot.lane.b32.xlu0 %v504_v29, %s370_s0  ;;  %92 = vrot.lane.b32.xlu1 %v83_v15, %s369_s29 }
  0x99   :  { %248 = vrot.lane.b32.xlu0 %v238_v26, %s369_s29  ;;  %96 = vrot.lane.b32.xlu1 %v85_v20, %s369_s29 }
  0x9d   :  { %246 = vrot.lane.b32.xlu1 %v496_v22, %s369_s29 }
  0xa1   :  { %250 = vrot.lane.b32.xlu1 %v504_v29, %s369_s29 }
  0xef   :  { %v95_v27 = vpop.permute.xlu0 %94  ;;  %v89_v30 = vpop.permute.xlu1 %88 }
  0xf0   :  { %v102_v32 = vmul.f32 2.0, %v89_v30  ;;  %v99_v38 = vsub.f32 %v95_v27, %v84_v8 }
  0xf2   :  { %v105_v34 = vadd.f32 %v102_v32, %v84_v8  ;;  %v111_v46 = vrot.slane %v99_v38, 1  ;;  %v124_v58 = vrot.slane %v99_v38, 2 }
  0xf4   :  { %v108_v39 = vadd.f32 %v105_v34, %v95_v27 }
  0xf6   :  { %v133_v48 = vrot.slane %v108_v39, 2 }
  0xfb   :  { %v87_v31 = vpop.permute.xlu0 %86 }
  0xfc   :  { %v101_v35 = vmul.f32 2.0, %v87_v31 }
  0xfe   :  { %v104_v40 = vadd.f32 %v101_v35, %v83_v15 }
  0xff   :  { %v91_v33 = vpop.permute.xlu0 %90 }
 0x100   :  { %v103_v41 = vmul.f32 2.0, %v91_v33 }
 0x102   :  { %v106_v52 = vadd.f32 %v103_v41, %v85_v20 }
 0x103   :  { %v243_v36 = vpop.permute.xlu1 %242  ;;  %v241_v37 = vpop.permute.xlu0 %240 }
 0x104   :  { %v255_v47 = vmul.f32 2.0, %v241_v37  ;;  %v256_v49 = vmul.f32 2.0, %v243_v36 }
 0x106   :  { %v258_v59 = vadd.f32 %v255_v47, %v496_v22  ;;  %v259_v3 = vadd.f32 %v256_v49, %v238_v26 }
 0x107   :  { %v93_v42 = vpop.permute.xlu1 %92  ;;  %v245_v43 = vpop.permute.xlu0 %244 }
 0x108   :  { %v98_v44 = vsub.f32 %v93_v42, %v83_v15  ;;  %v107_v45 = vadd.f32 %v104_v40, %v93_v42  ;;  %v257_v6 = vmul.f32 2.0, %v245_v43 }
 0x10a   :  { %v110_v50 = vrot.slane %v98_v44, 1  ;;  %v132_v51 = vrot.slane %v107_v45, 2  ;;  %v123_v53 = vrot.slane %v98_v44, 2  ;;  %v260_v40 = vadd.f32 %v257_v6, %v504_v29 }
 0x10b   :  { %v97_v54 = vpop.permute.xlu1 %96  ;;  %v249_v62 = vpop.permute.xlu0 %248 }
 0x10c   :  { %v115_v55 = vsel %vm113_vm6, %v110_v50, %v111_v46  ;;  %v136_v56 = vsel %vm51_vm2, %v132_v51, %v133_v48  ;;  %v100_v57 = vsub.f32 %v97_v54, %v85_v20  ;;  %v109_v61 = vadd.f32 %v106_v52, %v97_v54 }
 0x10d   :  { %v117_v60 = vmul.f32 2.0, %v115_v55  ;;  %v138_v63 = vsub.f32 %v136_v56, %v107_v45  ;;  %v127_v5 = vsel %vm51_vm2, %v123_v53, %v124_v58  ;;  %v253_v12 = vsub.f32 %v249_v62, %v238_v26 }
 0x10e   :  { %v112_v1 = vrot.slane %v100_v57, 1  ;;  %v125_v2 = vrot.slane %v100_v57, 2  ;;  %v134_v7 = vrot.slane %v109_v61, 2  ;;  %v526_v13 = vadd.f32 %v259_v3, %v249_v62 }
 0x10f   :  { %v120_v4 = vadd.f32 %v117_v60, %v98_v44  ;;  %v247_v8 = vpop.permute.xlu1 %246  ;;  %v144_v17 = vmul.f32 %v138_v63, %v138_v63  ;;  %v265_v35 = vrot.slane %v253_v12, 1  ;;  %v277_v56 = vrot.slane %v253_v12, 2 }
 0x110   :  { %v114_v9 = vsel %vm113_vm6, %v111_v46, %v112_v1  ;;  %v116_v11 = vsel %vm113_vm6, %v112_v1, %v110_v50  ;;  %v135_v16 = vsel %vm51_vm2, %v133_v48, %v134_v7  ;;  %v126_v18 = vsel %vm51_vm2, %v124_v58, %v125_v2 }
 0x111   :  { %v129_v14 = vadd.f32 %v127_v5, %v120_v4  ;;  %v118_v0 = vmul.f32 2.0, %v114_v9  ;;  %v119_v15 = vmul.f32 2.0, %v116_v11  ;;  %v128_v19 = vsel %vm51_vm2, %v125_v2, %v123_v53 }
 0x112   :  { %v137_v20 = vsel %vm51_vm2, %v134_v7, %v132_v51  ;;  %v139_v25 = vsub.f32 %v135_v16, %v108_v39  ;;  %v252_v27 = vsub.f32 %v247_v8, %v496_v22  ;;  %v261_v30 = vadd.f32 %v258_v59, %v247_v8 }
 0x113   :  { %v141_v21 = vmul.f32 %v129_v14, %v129_v14  ;;  %v121_v23 = vadd.f32 %v118_v0, %v99_v38  ;;  %v122_v24 = vadd.f32 %v119_v15, %v100_v57  ;;  %v251_v26 = vpop.permute.xlu1 %250  ;;  %v140_v28 = vsub.f32 %v137_v20, %v109_v61 }
 0x114   :  { %v254_v31 = vsub.f32 %v251_v26, %v504_v29  ;;  %v264_v36 = vrot.slane %v252_v27, 1  ;;  %v285_v37 = vrot.slane %v261_v30, 2  ;;  %v145_v39 = vmul.f32 %v139_v25, %v139_v25 }
 0x115   :  { %v147_v32 = vadd.f32 %v144_v17, %v141_v21  ;;  %v130_v33 = vadd.f32 %v126_v18, %v121_v23  ;;  %v131_v34 = vadd.f32 %v128_v19, %v122_v24  ;;  %v146_v44 = vmul.f32 %v140_v28, %v140_v28 }
 0x116   :  { %v266_v43 = vrot.slane %v254_v31, 1  ;;  %v286_v45 = vrot.slane %v526_v13, 2  ;;  %v268_v22 = vsel %vm113_vm6, %v264_v36, %v265_v35  ;;  %v263_v46 = vadd.f32 %v260_v40, %v251_v26 }
 0x117   :  { %v150_v41 = vadd.f32 1e-06, %v147_v32  ;;  %v142_v42 = vmul.f32 %v130_v33, %v130_v33  ;;  %v143_v38 = vmul.f32 %v131_v34, %v131_v34  ;;  %v270_v49 = vmul.f32 2.0, %v268_v22 }
 0x118   :  { %v289_v50 = vsel %vm51_vm2, %v285_v37, %v286_v45  ;;  %v276_v29 = vrot.slane %v252_v27, 2  ;;  %v267_v51 = vsel %vm113_vm6, %v265_v35, %v266_v43  ;;  %v269_v52 = vsel %vm113_vm6, %v266_v43, %v264_v36 }
 0x119   :  { %356 = vrsqrt.f32 %v150_v41  ;;  %v148_v47 = vadd.f32 %v145_v39, %v142_v42  ;;  %v149_v48 = vadd.f32 %v146_v44, %v143_v38  ;;  %v278_v53 = vrot.slane %v254_v31, 2 }
 0x11a   :  { %v273_v57 = vadd.f32 %v270_v49, %v252_v27  ;;  %v291_v58 = vsub.f32 %v289_v50, %v261_v30  ;;  %v271_v59 = vmul.f32 2.0, %v267_v51  ;;  %v272_v60 = vmul.f32 2.0, %v269_v52 }
 0x11b   :  { %v151_v54 = vadd.f32 1e-06, %v148_v47  ;;  %v152_v55 = vadd.f32 1e-06, %v149_v48  ;;  %v287_v61 = vrot.slane %v263_v46, 2  ;;  %v280_v62 = vsel %vm51_vm2, %v276_v29, %v277_v56 }
 0x11c   :  { %v279_v63 = vsel %vm51_vm2, %v277_v56, %v278_v53  ;;  %v282_v1 = vadd.f32 %v280_v62, %v273_v57  ;;  %v274_v2 = vadd.f32 %v271_v59, %v253_v12  ;;  %v275_v3 = vadd.f32 %v272_v60, %v254_v31 }
 0x11d   :  { %358 = vrsqrt.f32 %v151_v54  ;;  %v288_v4 = vsel %vm51_vm2, %v286_v45, %v287_v61  ;;  %v297_v5 = vmul.f32 %v291_v58, %v291_v58  ;;  %v281_v6 = vsel %vm51_vm2, %v278_v53, %v276_v29 }
 0x11e   :  { %360 = vrsqrt.f32 %v152_v55  ;;  %v290_v7 = vsel %vm51_vm2, %v287_v61, %v285_v37  ;;  %v292_v8 = vsub.f32 %v288_v4, %v526_v13  ;;  %v294_v9 = vmul.f32 %v282_v1, %v282_v1 }
 0x11f   :  { %v283_v11 = vadd.f32 %v279_v63, %v274_v2  ;;  %v284_v14 = vadd.f32 %v281_v6, %v275_v3  ;;  %v293_v0 = vsub.f32 %v290_v7, %v263_v46  ;;  %vm155_vm7 = vcmp.eq.f32.partialorder %v150_v41, inf }
 0x120   :  { %v298_v16 = vmul.f32 %v292_v8, %v292_v8  ;;  %v300_v17 = vadd.f32 %v297_v5, %v294_v9  ;;  %v158_v20 = vand.u32 2147483648, %v150_v41  ;;  %vm157_vm8 = vcmp.eq.f32.partialorder %v150_v41, 0.0 }
 0x121   :  { %v295_v18 = vmul.f32 %v283_v11, %v283_v11  ;;  %v296_v19 = vmul.f32 %v284_v14, %v284_v14  ;;  %v299_v21 = vmul.f32 %v293_v0, %v293_v0  ;;  %vm162_vm9 = vcmp.eq.f32.partialorder %v151_v54, inf }
 0x122   :  { %v303_v24 = vadd.f32 1e-06, %v300_v17  ;;  %vm164_vm10 = vcmp.eq.f32.partialorder %v151_v54, 0.0  ;;  %v165_v32 = vand.u32 2147483648, %v151_v54  ;;  %vm169_vm11 = vcmp.eq.f32.partialorder %v152_v55, inf }
 0x123   :  { %v357_v15 = vpop.eup %356  ;;  %v301_v10 = vadd.f32 %v298_v16, %v295_v18  ;;  %v302_v26 = vadd.f32 %v299_v21, %v296_v19  ;;  %v172_v35 = vand.u32 2147483648, %v152_v55  ;;  %vm171_vm12 = vcmp.eq.f32.partialorder %v152_v55, 0.0 }
 0x124   :  { %v154_v12 = vmul.f32 %v357_v15, %v150_v41  ;;  %362 = vrsqrt.f32 %v303_v24  ;;  %vm308_vm13 = vcmp.eq.f32.partialorder %v303_v24, inf  ;;  %v311_v38 = vand.u32 2147483648, %v303_v24 }
 0x125   :  { %v304_v30 = vadd.f32 1e-06, %v301_v10  ;;  %v305_v31 = vadd.f32 1e-06, %v302_v26  ;;  %vm310_vm14 = vcmp.eq.f32.partialorder %v303_v24, 0.0 }
 0x126   :  { %v156_v23 = vsel %vm155_vm7, %v150_v41, %v154_v12 }
 0x127   :  { %v159_v25 = vsel %vm157_vm8, %v158_v20, %v156_v23  ;;  %v359_v13 = vpop.eup %358  ;;  %364 = vrsqrt.f32 %v304_v30  ;;  %vm315_vm15 = vcmp.eq.f32.partialorder %v304_v30, inf  ;;  %v318_v46 = vand.u32 2147483648, %v304_v30 }
 0x128   :  { %174 = vst [vmem:[%s578_s1] sm:$0xff] %v159_v25  ;;  %v361_v28 = vpop.eup %360  ;;  %v161_v27 = vmul.f32 %v359_v13, %v151_v54  ;;  %366 = vrsqrt.f32 %v305_v31  ;;  %vm317_vm0 = vcmp.eq.f32.partialorder %v304_v30, 0.0  ;;  %vm322_vm1 = vcmp.eq.f32.partialorder %v305_v31, inf }
 0x129   :  { %v168_v33 = vmul.f32 %v361_v28, %v152_v55  ;;  %v325_v49 = vand.u32 2147483648, %v305_v31  ;;  %vm324_vm2 = vcmp.eq.f32.partialorder %v305_v31, 0.0 }
 0x12a   :  { %v163_v34 = vsel %vm162_vm9, %v151_v54, %v161_v27 }
 0x12b   :  { %v166_v36 = vsel %vm164_vm10, %v165_v32, %v163_v34  ;;  %v170_v37 = vsel %vm169_vm11, %v152_v55, %v168_v33 }
 0x12c   :  { %v173_v40 = vsel %vm171_vm12, %v172_v35, %v170_v37  ;;  %175 = vst [vmem:[%s578_s1 + $0x8] sm:$0xff] %v166_v36 }
 0x12d   :  { %176 = vst [vmem:[%s578_s1 + $0x10] sm:$0x3] %v173_v40 }
 0x12e   :  { %v363_v41 = vpop.eup %362 }
 0x12f   :  { %v307_v42 = vmul.f32 %v363_v41, %v303_v24 }
 0x131   :  { %v365_v43 = vpop.eup %364  ;;  %v309_v39 = vsel %vm308_vm13, %v303_v24, %v307_v42 }
 0x132   :  { %v367_v44 = vpop.eup %366  ;;  %v312_v45 = vsel %vm310_vm14, %v311_v38, %v309_v39  ;;  %v314_v22 = vmul.f32 %v365_v43, %v304_v30 }
 0x133   :  { %350 = vst [vmem:[%s578_s1 + $0x18] sm:$0xff] %v312_v45  ;;  %v321_v47 = vmul.f32 %v367_v44, %v305_v31 }
 0x134   :  { %v316_v48 = vsel %vm315_vm15, %v304_v30, %v314_v22 }
 0x135   :  { %v319_v50 = vsel %vm317_vm0, %v318_v46, %v316_v48  ;;  %v323_v29 = vsel %vm322_vm1, %v305_v31, %v321_v47 }
 0x136   :  { %v326_v51 = vsel %vm324_vm2, %v325_v49, %v323_v29  ;;  %351 = vst [vmem:[%s578_s1 + $0x20] sm:$0xff] %v319_v50 }
 0x137   :  { %352 = vst [vmem:[%s578_s1 + $0x28] sm:$0x3] %v326_v51 }

</bundles_post_ra>
